<compile_context>
chip_gen: v5e
topology: v5e:2x2
jax: 0.10.0
libtpu: 0.0.40
codegen_flags: <defaults>
</compile_context>

<pallas_src>
import functools
import math

import jax
import jax.numpy as jnp
from jax.experimental import pallas as pl
from jax.experimental.pallas import tpu as pltpu

_MIB = 1024 * 1024


def _round_up(x, m):
    return ((x + m - 1) // m) * m


def _tpu_vmem_bytes():
    try:
        return int(pltpu.get_tpu_info().vmem_capacity_bytes)
    except Exception:  # interpret mode / older jax: assume the smallest (v7x, 64 MiB)
        return 64 * _MIB


def _choose_tiles(N, tm, tk, vmem_bytes):
    """Pick (Np, tm, tk): tm | Np, tk | Np, tk a multiple of 128, >= 2 row tiles."""
    if tm is None:
        tm = 512
    if tk is None:
        # v7x (64 MiB VMEM, ~3.2 TB/s HBM) benefits from bigger K tiles per grid step.
        tk = 2048 if vmem_bytes <= 64 * _MIB else 1024
    Np0 = _round_up(N, 128)
    tm = max(128, (min(tm, Np0) // 128) * 128)
    Np = _round_up(Np0, tm)            # pad rows up instead of shrinking tiles
    # largest tk that is a multiple of tm, divides Np and is <= requested tk
    ntiles = Np // tm
    j = 1
    for cand in range(max(1, tk // tm), 0, -1):
        if ntiles % cand == 0:
            j = cand
            break
    tk = j * tm
    # v7x has 2 TensorCores sharing the "parallel" row axis: keep >= 2 row tiles.
    if Np // tm < 2 and Np // 2 >= 8:  # Np is a multiple of 128 -> Np//2 is a multiple of 64
        tm = Np // 2
    return Np, tm, tk


# ---------------- stage A: xw = x @ W + b (row-tiled) ----------------

def _linear_bias_kernel(x_ref, w_ref, b_ref, o_ref):
    x = x_ref[...].astype(jnp.float32)
    acc = jnp.dot(x, w_ref[...], preferred_element_type=jnp.float32)
    o_ref[...] = (acc + b_ref[...]).astype(o_ref.dtype)


# ---------------- stage B: y = G @ xw (row tiles x reduction tiles) ----------------

def _spmm_kernel(g_ref, xw_ref, o_ref, *scratch, apply_relu, tk, xw_resident):
    k = pl.program_id(1)
    acc_ref = scratch[0] if scratch else o_ref   # f32 output -> accumulate in place

    @pl.when(k == 0)
    def _init():
        acc_ref[...] = jnp.zeros_like(acc_ref)

    if xw_resident:
        off = pl.multiple_of(k * tk, 128)
        xw = xw_ref[pl.ds(off, tk), :]
    else:
        xw = xw_ref[...]
    acc_ref[...] += jnp.dot(g_ref[...], xw, preferred_element_type=jnp.float32)

    if scratch or apply_relu:
        @pl.when(k == pl.num_programs(1) - 1)
        def _finalize():
            y = acc_ref[...]
            if apply_relu:
                y = jnp.maximum(y, 0.0)
            o_ref[...] = y.astype(o_ref.dtype)


# ---------------- one conv layer on pre-padded operands ----------------

def _conv_padded(x_p, G_p, weight, bias, *, apply_relu, out_dtype,
                 matmul_dtype, Np, tm, tk, vmem_bytes):
    """y_p = G_p @ (x_p @ W_p + b_p), all operands pre-padded.

    Caller-maintained invariants:
      * x_p is (Np, in_p) with rows >= N equal to zero.
      * G_p is (Np, Np) in matmul_dtype with padded rows AND columns exactly zero
        (required because padded xw rows equal the bias, not zero).
    Returns the padded (Np, out_p) result in out_dtype (not sliced).
    """
    in_p = x_p.shape[1]
    in_ft, out_ft = weight.shape
    out_p = _round_up(out_ft, 128)          # lane-dense output columns

    if bias is None:
        bias = jnp.zeros((out_ft,), jnp.float32)
    w_p = jnp.pad(weight.astype(jnp.float32),
                  ((0, in_p - in_ft), (0, out_p - out_ft)))
    b_p = jnp.pad(bias.astype(jnp.float32).reshape(1, -1),
                  ((0, 0), (0, out_p - out_ft)))

    mm_item = jnp.dtype(matmul_dtype).itemsize
    out_item = jnp.dtype(out_dtype).itemsize
    x_item = jnp.dtype(x_p.dtype).itemsize

    # Physical VMEM minus headroom for compiler scratch / pipeline buffers:
    # ~56 MiB on v7x (64 MiB phys), up to 120 MiB on v5e/v6e (128 MiB phys).
    vmem_cap = max(32 * _MIB, vmem_bytes - 8 * _MIB)

    # ---- stage A: xw = x @ W + b (stored in matmul_dtype, lane-dense) ----
    vmem_a = (2 * tm * in_p * x_item + 2 * in_p * out_p * 4
              + 2 * tm * out_p * mm_item + 4 * _MIB)
    xw = pl.pallas_call(
        _linear_bias_kernel,
        out_shape=jax.ShapeDtypeStruct((Np, out_p), matmul_dtype),
        grid_spec=pltpu.PrefetchScalarGridSpec(
            num_scalar_prefetch=0,
            grid=(Np // tm,),
            in_specs=[
                pl.BlockSpec((tm, in_p), lambda i: (i, 0)),
                pl.BlockSpec((in_p, out_p), lambda i: (0, 0)),
                pl.BlockSpec((1, out_p), lambda i: (0, 0)),
            ],
            out_specs=pl.BlockSpec((tm, out_p), lambda i: (i, 0)),
        ),
        compiler_params=pltpu.CompilerParams(
            dimension_semantics=("parallel",),
            vmem_limit_bytes=int(min(vmem_cap, max(32 * _MIB, vmem_a)))),
        cost_estimate=pl.CostEstimate(
            flops=2 * Np * in_p * out_p,
            transcendentals=0,
            bytes_accessed=int(Np * in_p * x_item + in_p * out_p * 4
                               + Np * out_p * mm_item)),
    )(x_p, w_p, b_p)

    # ---- stage B: y = G @ xw ----
    acc_in_out = jnp.dtype(out_dtype) == jnp.dtype(jnp.float32)
    g_buf = 2 * tm * tk * mm_item                 # double-buffered G tile
    o_buf = 2 * tm * out_p * out_item             # double-buffered output tile
    acc_buf = 0 if acc_in_out else tm * out_p * 4
    xw_res_buf = 2 * Np * out_p * mm_item         # conservative (assume double buffers)
    xw_resident = (g_buf + o_buf + acc_buf + xw_res_buf + 4 * _MIB) <= vmem_cap

    if xw_resident:
        xw_spec = pl.BlockSpec((Np, out_p), lambda i, k: (0, 0))
        xw_buf = xw_res_buf
        xw_hbm_reads = Np * out_p * mm_item                    # read once
    else:
        xw_spec = pl.BlockSpec((tk, out_p), lambda i, k: (k, 0))
        xw_buf = 2 * tk * out_p * mm_item
        xw_hbm_reads = (Np // tm) * Np * out_p * mm_item       # re-streamed per row tile

    vmem_need = g_buf + o_buf + acc_buf + xw_buf
    vmem_limit = int(min(vmem_cap, max(32 * _MIB, vmem_need + 4 * _MIB)))
    scratch_shapes = [] if acc_in_out else [pltpu.VMEM((tm, out_p), jnp.float32)]

    y_p = pl.pallas_call(
        functools.partial(_spmm_kernel, apply_relu=apply_relu, tk=tk,
                          xw_resident=xw_resident),
        out_shape=jax.ShapeDtypeStruct((Np, out_p), out_dtype),
        grid_spec=pltpu.PrefetchScalarGridSpec(
            num_scalar_prefetch=0,
            grid=(Np // tm, Np // tk),                 # (row tiles, reduction tiles)
            in_specs=[
                pl.BlockSpec((tm, tk), lambda i, k: (i, k)),   # G tile (streamed)
                xw_spec,                                        # xw (resident or streamed)
            ],
            out_specs=pl.BlockSpec((tm, out_p), lambda i, k: (i, 0)),
            scratch_shapes=scratch_shapes,
        ),
        compiler_params=pltpu.CompilerParams(
            dimension_semantics=("parallel", "arbitrary"),  # rows shard across TCs
            vmem_limit_bytes=vmem_limit),
        cost_estimate=pl.CostEstimate(
            flops=2 * Np * Np * out_p,
            transcendentals=0,
            bytes_accessed=int(Np * Np * mm_item + xw_hbm_reads
                               + Np * out_p * out_item)),
    )(G_p, xw)

    return y_p


# ---------------- public API ----------------

def hgnn_conv(x, G, weight, bias=None, *, apply_relu=False,
              matmul_dtype=jnp.bfloat16, tm=None, tk=None):
    """HGNN_conv.forward: G @ (x @ W + b), optional fused relu.

    Casts/pads G per call; for repeated application of the same G use
    hgnn_forward, which hoists the G preparation out of the per-layer kernels.
    """
    N = x.shape[0]
    out_ft = weight.shape[1]
    vmem_bytes = _tpu_vmem_bytes()
    Np, tm, tk = _choose_tiles(N, tm, tk, vmem_bytes)
    G_p = jnp.pad(G.astype(matmul_dtype), ((0, Np - N), (0, Np - N)))
    x_p = jnp.pad(x, ((0, Np - N), (0, 0)))
    y_p = _conv_padded(x_p, G_p, weight, bias, apply_relu=apply_relu,
                       out_dtype=x.dtype, matmul_dtype=matmul_dtype,
                       Np=Np, tm=tm, tk=tk, vmem_bytes=vmem_bytes)
    return y_p[:N, :out_ft]


def hgnn_forward(x, G, w1, b1, w2, b2, *, dropout_p=0.5, training=True,
                 rng_key=None, matmul_dtype=jnp.bfloat16, tm=None, tk=None):
    """HGNN.forward: hgc2(dropout(relu(hgc1(x, G))), G).

    The PyTorch reference calls F.dropout(x, p) whose functional default is
    training=True (dropout applied unconditionally); pass training=False to get
    F.dropout(..., training=False) behaviour.  G is cast/padded ONCE and reused
    by both conv layers; the intermediate h stays in its padded, lane-dense
    matmul_dtype layout between layers (only the final output is sliced).
    """
    N = x.shape[0]
    out_ft = w2.shape[1]
    out_dtype = x.dtype
    vmem_bytes = _tpu_vmem_bytes()
    Np, tm, tk = _choose_tiles(N, tm, tk, vmem_bytes)

    # G prepared once; zero padded rows AND columns (invariant _conv_padded relies on).
    G_p = jnp.pad(G.astype(matmul_dtype), ((0, Np - N), (0, Np - N)))
    x_p = jnp.pad(x, ((0, Np - N), (0, 0)))

    h_p = _conv_padded(x_p, G_p, w1, b1, apply_relu=True,
                       out_dtype=matmul_dtype, matmul_dtype=matmul_dtype,
                       Np=Np, tm=tm, tk=tk, vmem_bytes=vmem_bytes)

    if dropout_p > 0.0 and training:
        if rng_key is None:
            raise ValueError("rng_key is required when dropout is active")
        keep = 1.0 - dropout_p
        # TODO(synk): dropout mask stays in XLA (elementwise, bandwidth-trivial).
        mask = jax.random.bernoulli(rng_key, keep, h_p.shape)
        h_p = jnp.where(mask, h_p / keep, 0.0).astype(h_p.dtype)

    y_p = _conv_padded(h_p, G_p, w2, b2, apply_relu=False,
                       out_dtype=out_dtype, matmul_dtype=matmul_dtype,
                       Np=Np, tm=tm, tk=tk, vmem_bytes=vmem_bytes)
    return y_p[:N, :out_ft]


if __name__ == "__main__":
    # Small shapes consistent with HGNN: N nodes = 128, in_ch = 64, n_hid = 32.
    N, in_ch, n_hid = 128, 64, 32
    key = jax.random.PRNGKey(0)
    kx, kg, kw1, kb1, kw2, kb2, kd = jax.random.split(key, 7)

    x = jax.random.normal(kx, (N, in_ch), dtype=jnp.float32)
    # Dense stand-in for the normalized hypergraph Laplacian G.
    G = jax.random.normal(kg, (N, N), dtype=jnp.float32) / jnp.sqrt(jnp.float32(N))

    # reset_parameters(): uniform(-stdv, stdv) with stdv = 1/sqrt(out_ft)
    stdv = 1.0 / math.sqrt(n_hid)
    w1 = jax.random.uniform(kw1, (in_ch, n_hid), jnp.float32, -stdv, stdv)
    b1 = jax.random.uniform(kb1, (n_hid,), jnp.float32, -stdv, stdv)
    w2 = jax.random.uniform(kw2, (n_hid, n_hid), jnp.float32, -stdv, stdv)
    b2 = jax.random.uniform(kb2, (n_hid,), jnp.float32, -stdv, stdv)

    mm = functools.partial(jnp.matmul, precision=jax.lax.Precision.HIGHEST)

    # 1) Exact-semantics check: f32 path, full 2-layer forward (dropout_p=0 -> identity).
    out_f32 = hgnn_forward(x, G, w1, b1, w2, b2, dropout_p=0.0,
                           matmul_dtype=jnp.float32)
    out_f32 = jax.block_until_ready(out_f32)
    h_ref = jnp.maximum(mm(G, mm(x, w1) + b1), 0.0)
    ref_f32 = mm(G, mm(h_ref, w2) + b2)
    assert out_f32.shape == (N, n_hid)
    assert jnp.allclose(out_f32, ref_f32, atol=2e-3, rtol=2e-3), "f32 forward mismatch"

    # 2) Default bf16 fast path, single conv layer vs dtype-matched reference.
    y_bf = hgnn_conv(x, G, w1, b1, apply_relu=True, matmul_dtype=jnp.bfloat16)
    y_bf = jax.block_until_ready(y_bf)
    xw_ref = (mm(x, w1) + b1).astype(jnp.bfloat16).astype(jnp.float32)
    y_ref = jnp.maximum(mm(G.astype(jnp.bfloat16).astype(jnp.float32), xw_ref), 0.0)
    assert y_bf.shape == (N, n_hid)
    assert jnp.allclose(y_bf, y_ref, atol=1e-2, rtol=1e-2), "bf16 conv mismatch"

    # 3) Default bf16 path, full forward with dropout (reference default behaviour).
    out_bf = hgnn_forward(x, G, w1, b1, w2, b2, dropout_p=0.5, rng_key=kd)
    out_bf = jax.block_until_ready(out_bf)
    assert out_bf.shape == (N, n_hid)
    assert bool(jnp.all(jnp.isfinite(out_bf)))

    print("KERNEL_OK")
</pallas_src>

<mosaic_0001>
module attributes {stable_mosaic.version = 11 : i64} {
  func.func @_linear_bias_kernel(%arg0: i32, %arg1: memref<64x64xf32, #tpu.memory_space<vmem>>, %arg2: memref<64x128xf32, #tpu.memory_space<vmem>>, %arg3: memref<1x128xf32, #tpu.memory_space<vmem>>, %arg4: memref<64x128xf32, #tpu.memory_space<vmem>>) attributes {dimension_semantics = [#tpu.dimension_semantics<parallel>], iteration_bounds = array<i64: 2>, scalar_prefetch = 0 : i64, scratch_operands = 0 : i64, tpu.core_type = #tpu.core_type<tc>, window_params = [{transform_indices = @transform_0, window_bounds = array<i64: 64, 64>}, {pipeline_mode = #tpu.pipeline_mode<synchronous>, transform_indices = @transform_1, window_bounds = array<i64: 64, 128>}, {pipeline_mode = #tpu.pipeline_mode<synchronous>, transform_indices = @transform_2, window_bounds = array<i64: 1, 128>}, {transform_indices = @transform_3, window_bounds = array<i64: 64, 128>}]} {
    %c0 = arith.constant 0 : index
    %c0_0 = arith.constant 0 : index
    %0 = vector.load %arg1[%c0, %c0_0] : memref<64x64xf32, #tpu.memory_space<vmem>>, vector<64x64xf32>
    %c0_1 = arith.constant 0 : index
    %c0_2 = arith.constant 0 : index
    %1 = vector.load %arg2[%c0_1, %c0_2] : memref<64x128xf32, #tpu.memory_space<vmem>>, vector<64x128xf32>
    %cst = arith.constant dense<0.000000e+00> : vector<64x128xf32>
    %2 = tpu.matmul %0, %1, %cst {dimension_numbers = #tpu.dot_dimension_numbers<[1], [0], [0], [1], [0, 0, 1, 1], [], []>} : vector<64x64xf32>, vector<64x128xf32>, vector<64x128xf32> -> vector<64x128xf32>
    %c0_3 = arith.constant 0 : index
    %c0_4 = arith.constant 0 : index
    %3 = vector.load %arg3[%c0_3, %c0_4] : memref<1x128xf32, #tpu.memory_space<vmem>>, vector<1x128xf32>
    %4 = vector.broadcast %3 : vector<1x128xf32> to vector<64x128xf32>
    %5 = arith.addf %2, %4 : vector<64x128xf32>
    %c0_5 = arith.constant 0 : index
    %c0_6 = arith.constant 0 : index
    %6 = vector.load %arg4[%c0_5, %c0_6] : memref<64x128xf32, #tpu.memory_space<vmem>>, vector<64x128xf32>
    tpu.vector_store %arg4[%c0_5, %c0_6], %5 {strides = array<i32>} : memref<64x128xf32, #tpu.memory_space<vmem>>, vector<64x128xf32>,
    return
  }
  func.func @transform_0(%arg0: i32) -> (i32, i32) {
    %c0_i32 = arith.constant 0 : i32
    %c0_i32_0 = arith.constant 0 : i32
    return %arg0, %c0_i32 : i32, i32
  }
  func.func @transform_1(%arg0: i32) -> (i32, i32) {
    %c0_i32 = arith.constant 0 : i32
    %c0_i32_0 = arith.constant 0 : i32
    %c0_i32_1 = arith.constant 0 : i32
    return %c0_i32, %c0_i32_0 : i32, i32
  }
  func.func @transform_2(%arg0: i32) -> (i32, i32) {
    %c0_i32 = arith.constant 0 : i32
    %c0_i32_0 = arith.constant 0 : i32
    %c0_i32_1 = arith.constant 0 : i32
    return %c0_i32, %c0_i32_0 : i32, i32
  }
  func.func @transform_3(%arg0: i32) -> (i32, i32) {
    %c0_i32 = arith.constant 0 : i32
    %c0_i32_0 = arith.constant 0 : i32
    return %arg0, %c0_i32 : i32, i32
  }
}

</mosaic_0001>

<bundles_post_ra>
// kernel: tpu_custom_call.1
= control target key start
LH: loop header
LB: loop body
LE: loop exit
PB: predicated region body
PF: predicated region fallthrough
CT: control target
= control target key end

     0   :  { %8 = vsyncpa [#allocation3], 0  ;;  %s640_s0 = inlined_call_operand.vmem [shape: f32[128,64], index: 0, kind: input, shape index: {}]   ;;  %s641_s1 = inlined_call_operand.vmem [shape: f32[64,128], index: 1, kind: input, shape index: {}]   ;;  %s642_s2 = inlined_call_operand.vmem [shape: f32[1,128], index: 2, kind: input, shape index: {}]   ;;  %s643_s3 = inlined_call_operand.hbm [shape: f32[128,128], index: 3, kind: output, shape index: {}]  }
   0x1   :  { %10 = vsyncpa [#allocation3 + $0x1], 0  ;;  %s517_s12 = smov 0   ;;  %s519_s13 = smov 0  }
   0x2   :  { %s521_s14 = smov 0   ;;  %s523_s15 = smov 0  }
   0x3 LB: > { %s538_s16 = sadd.s32 4294967295, %s493_s15   ;;  %s344_s17 = sadd.s32 4294967294, %s493_s15   ;;  %s493_s15 = sphi %s523_s15, %s649_s15   ;;  %s489_s14 = sphi %s521_s14, %s648_s14   ;;  %s485_s13 = sphi %s519_s13, %s647_s13   ;;  %s481_s12 = sphi %s517_s12, %s646_s12  }
   0x4   : > { %s542_s18 = sadd.s32 1, %s493_s15   ;;  %s91_s19 = sadd.s32 1, %s489_s14 }
   0x5   : > { %s88_s20 = ssub.s32 %s493_s15, %s542_s18  ;;  %p101_p0 = scmp.ne.s32.totalorder %s489_s14, %s485_s13 }
   0x6   : > { %p89_p1 = scmp.eq.s32.totalorder %s88_s20, 0  ;;  %p102_p2 = scmp.eq.s32.totalorder %s538_s16, 1 }
   0x7   : > { %p107_p3 = scmp.ne.s32.totalorder %s485_s13, %s481_s12  ;;  %p108_p4 = scmp.eq.s32.totalorder %s344_s17, 1 }
   0x8   : > { %s553_s21 = scalar_select %p89_p1, %s489_s14, %s91_s19  }
   0x9   : > { %p555_p5 = por %p102_p2, %p101_p0  ;;  %p559_p6 = por %p108_p4, %p107_p3 }
   0xa   : > { %p347_p7 = scmp.ge.s32.totalorder %s493_s15, 1  ;;  %p141_p8 = scmp.lt.s32.totalorder %s493_s15, 3 }
   0xc   : > { %p142_p9 = pnand %p347_p7, %p141_p8 }
   0xd   : > { %s349_s28 = sshll.u32 (!%p142_p9), %s538_s16, 3  ;;  %s162_s27 = sand.u32 (!%p142_p9), 1, %s485_s13  }
   0xe   : > { %145 = sbr.rel (%p142_p9) target bundleno = 182 (0xb6), region = 32  ;;  %p166_p10 = scmp.lt.s32.totalorder (!%p142_p9), %s349_s28, 15 }
   0xf   : > { %s364_s5 = sshll.u32 (!%p142_p9), %s538_s16, 6  ;;  %s267_s16 = scalar_lea.sflag (!%p142_p9), [#allocation3], %s162_s27 }
  0x13   : > { %v187_v0 = vld [vmem:[%s641_s1 + $0x38] sm:$0xff]  ;;  %v186_v1 = vld [vmem:[%s641_s1 + $0x30] sm:$0xff]  ;;  %v185_v2 = vld [vmem:[%s641_s1 + $0x28] sm:$0xff]  ;;  %s651_s28 = smov (!%p166_p10, %s349_s28), 15  ;;  %vm192_vm0 = vcmask 523264  }
  0x14   : > { %366 = vmatpush.msra.mxu2 %v187_v0  ;;  %367 = vmatpush.msra.mxu3 %v187_v0  ;;  %v184_v3 = vld [vmem:[%s641_s1 + $0x20] sm:$0xff]  ;;  %v183_v4 = vld [vmem:[%s641_s1 + $0x18] sm:$0xff]  ;;  %s350_s8 = sshll.u32 %s651_s28, 3  ;;  %v182_v5 = vld [vmem:[%s641_s1 + $0x10] sm:$0xff]  ;;  %s348_s28 = sshll.u32 %s162_s27, 6 }
  0x15   : > { %225 = vmatpush.msra.mxu0 %v187_v0  ;;  %365 = vmatpush.msra.mxu1 %v187_v0  ;;  %v181_v6 = vld [vmem:[%s641_s1 + $0x8] sm:$0xff]  ;;  %s169_s24 = scalar_lea.vmem %s640_s0, %s350_s8  ;;  %v180_v7 = vld [vmem:[%s641_s1] sm:$0xff]  ;;  %s164_s4 = scalar_lea.vmem [#allocation2], %s348_s28 }
  0x16   : > { %369 = vmatpush.msra.mxu2 %v186_v1  ;;  %370 = vmatpush.msra.mxu3 %v186_v1  ;;  %v176_v8 = vld [vmem:[%s169_s24 + $0x20] sm:$0xff]  ;;  %v178_v9 = vld [vmem:[%s169_s24 + $0x30] sm:$0xff]  ;;  %v177_v12 = vld [vmem:[%s169_s24 + $0x28] sm:$0xff]  ;;  %s278_s8 = scalar_lea.hbm %s643_s3, %s364_s5  ;;  %s279_s9 = sshll.u32 %s164_s4, 4  ;;  %s280_s9 = int_to_ptr.vmem [resolvable:$true] %s279_s9 }
  0x17   : > { %226 = vmatpush.msra.mxu0 %v186_v1  ;;  %368 = vmatpush.msra.mxu1 %v186_v1  ;;  %v172_v10 = vld [vmem:[%s169_s24] sm:$0xff]  ;;  %v174_v11 = vld [vmem:[%s169_s24 + $0x10] sm:$0xff]  ;;  %v179_v13 = vld [vmem:[%s169_s24 + $0x38] sm:$0xff]  ;;  %s281_s10 = sshll.u32 %s278_s8, 4  ;;  %s282_s10 = int_to_ptr.hbm [resolvable:$true] %s281_s10 }
  0x18   : > { %372 = vmatpush.msra.mxu2 %v185_v2  ;;  %373 = vmatpush.msra.mxu3 %v185_v2  ;;  %v173_v14 = vld [vmem:[%s169_s24 + $0x8] sm:$0xff]  ;;  %v175_v15 = vld [vmem:[%s169_s24 + $0x18] sm:$0xff]  ;;  %v430_v16 = vld [vmem:[%s642_s2] ss:$0 sm:$0xff]  ;;  %s445_s11 = sshra.s32 %s282_s10, 4  ;;  %s451_s24 = scalar_lea.hbm %s643_s3, 128  ;;  %s446_s11 = int_to_ptr.hbm [resolvable:$true] %s445_s11 }
  0x19   : > { %227 = vmatpush.msra.mxu0 %v185_v2  ;;  %371 = vmatpush.msra.mxu1 %v185_v2  ;;  %s447_s17 = scalar_lea.hbm %s446_s11, 64  ;;  %p452_p0 = scmp.lt.s32.totalorder %s446_s11, %s643_s3 }
  0x1a   : > { %375 = vmatpush.msra.mxu2 %v184_v3  ;;  %376 = vmatpush.msra.mxu3 %v184_v3  ;;  %p448_p11 = scmp.ne.s32.totalorder %s446_s11, %s447_s17  ;;  %p453_p1 = scmp.lt.s32.totalorder %s451_s24, %s447_s17 }
  0x1b   : > { %228 = vmatpush.msra.mxu0 %v184_v3  ;;  %374 = vmatpush.msra.mxu1 %v184_v3 }
  0x1c   : > { %378 = vmatpush.msra.mxu2 %v183_v4  ;;  %379 = vmatpush.msra.mxu3 %v183_v4  ;;  %p449_p12 = pnand %p448_p11, %p555_p5  ;;  %p454_p2 = por %p453_p1, %p452_p0 }
  0x1d   : > { %229 = vmatpush.msra.mxu0 %v183_v4  ;;  %377 = vmatpush.msra.mxu1 %v183_v4 }
  0x1e   : > { %381 = vmatpush.msra.mxu2 %v182_v5  ;;  %382 = vmatpush.msra.mxu3 %v182_v5  ;;  %p450_p13 = pneg %p449_p12 }
  0x1f   : > { %230 = vmatpush.msra.mxu0 %v182_v5  ;;  %380 = vmatpush.msra.mxu1 %v182_v5 }
  0x20   : > { %384 = vmatpush.msra.mxu2 %v181_v6  ;;  %385 = vmatpush.msra.mxu3 %v181_v6  ;;  %p455_p3 = pnand %p454_p2, %p450_p13 }
  0x21   : > { %231 = vmatpush.msra.mxu0 %v181_v6  ;;  %383 = vmatpush.msra.mxu1 %v181_v6 }
  0x22   : > { %387 = vmatpush.msra.mxu2 %v180_v7  ;;  %388 = vmatpush.msra.mxu3 %v180_v7 }
  0x23   : > { %355 = vmatmul.msk.f32.vlgmr.msra.gmra.mxu2 %vm192_vm0, %v176_v8  ;;  %357 = vmatmul.msk.f32.vlgmr.msra.gmra.mxu3 %vm192_vm0, %v178_v9 }
  0x24   : > { %232 = vmatpush.msra.mxu0 %v180_v7  ;;  %386 = vmatpush.msra.mxu1 %v180_v7 }
  0x25   : > { %351 = vmatmul.msk.f32.vlgmr.msra.gmra.mxu0 %vm192_vm0, %v172_v10  ;;  %353 = vmatmul.msk.f32.vlgmr.msra.gmra.mxu1 %vm192_vm0, %v174_v11 }
  0x2b   : > { %356 = vmatmul.msk.f32.gmra.mxu2 %vm192_vm0, %v177_v12  ;;  %358 = vmatmul.msk.f32.gmra.mxu3 %vm192_vm0, %v179_v13 }
  0x2d   : > { %352 = vmatmul.msk.f32.gmra.mxu0 %vm192_vm0, %v173_v14  ;;  %354 = vmatmul.msk.f32.gmra.mxu1 %vm192_vm0, %v175_v15 }
  0xa2   : > { %v234_v17 = vpop.f32.mrf.mxu0  ;;  %v240_v18 = vpop.f32.mrf.mxu1 }
  0xa3   : > { %v235_v19 = vadd.f32 %v430_v16, %v234_v17  ;;  %v241_v20 = vadd.f32 %v430_v16, %v240_v18 }
  0xa5   : > { %258 = vst [vmem:[%s164_s4] sm:$0xff] %v235_v19 }
  0xa6   : > { %260 = vst [vmem:[%s164_s4 + $0x10] sm:$0xff] %v241_v20  ;;  %v246_v21 = vpop.f32.mrf.mxu2  ;;  %v252_v22 = vpop.f32.mrf.mxu3 }
  0xa7   : > { %v247_v23 = vadd.f32 %v430_v16, %v246_v21  ;;  %v253_v24 = vadd.f32 %v430_v16, %v252_v22 }
  0xa9   : > { %262 = vst [vmem:[%s164_s4 + $0x20] sm:$0xff] %v247_v23 }
  0xaa   : > { %264 = vst [vmem:[%s164_s4 + $0x30] sm:$0xff] %v253_v24  ;;  %v237_v25 = vpop.f32.mrf.mxu0  ;;  %v243_v26 = vpop.f32.mrf.mxu1 }
  0xab   : > { %v238_v27 = vadd.f32 %v430_v16, %v237_v25  ;;  %v244_v28 = vadd.f32 %v430_v16, %v243_v26 }
  0xad   : > { %259 = vst [vmem:[%s164_s4 + $0x8] sm:$0xff] %v238_v27 }
  0xae   : > { %261 = vst [vmem:[%s164_s4 + $0x18] sm:$0xff] %v244_v28  ;;  %v249_v29 = vpop.f32.mrf.mxu2  ;;  %v255_v30 = vpop.f32.mrf.mxu3 }
  0xaf   : > { %v250_v31 = vadd.f32 %v430_v16, %v249_v29  ;;  %v256_v32 = vadd.f32 %v430_v16, %v255_v30 }
  0xb1   : > { %263 = vst [vmem:[%s164_s4 + $0x28] sm:$0xff] %v250_v31 }
  0xb2   : > { %265 = vst [vmem:[%s164_s4 + $0x38] sm:$0xff] %v256_v32 }
  0xb3   : > { %458 = shalt.err (!%p455_p3)
}
  0xb4   : > { %s495_s27 = smov 128   ;;  %s496_s28 = smov 8  }
  0xb5   : > { %389 = dma.vmem_to_hbm [thread:$0]  (%p555_p5), %s280_s9, 1024, %s282_s10, %s267_s16, %s495_s27, %s495_s27, %s496_s28  }
  0xb6 PF: > { %p395_p4 = scmp.ge.s32.totalorder %s493_s15, 2  ;;  %s296_s29 = sand.u32 1, %s481_s12  }
  0xb7   : > { %s297_s30 = scalar_lea.sflag [#allocation3], %s296_s29 }
  0xb8   : > { %p392_p7 = pnand %p395_p4, %p559_p6 }
  0xba   : > { %p393_p8 = pneg %p392_p7 }
  0xbc   : > { %476 = dma.done.wait (%p393_p8), %s297_s30, 1024  }
  0xbd   : > { %478 = vsyncadd (%p393_p8), %s297_s30, 4294966272  ;;  %p13_p9 = scmp.ge.s32.totalorder %s542_s18, 4   ;;  %s646_s12 = smov %s485_s13 }
  0xbe   : > { %s647_s13 = smov %s489_s14  ;;  %s648_s14 = smov %s553_s21 }
  0xbf   : > { %s649_s15 = smov %s542_s18  ;;  %15 = sbr.rel (!%p13_p9) target bundleno = 3 (0x3), region = 67 }
  0xc4   :  { %303 = vsyncpa [#allocation3], 1 }
  0xc5   :  { %305 = vsyncpa [#allocation3 + $0x1], 1 }

</bundles_post_ra>
